<compile_context>
chip_gen: v7x
topology: tpu7x:2x2x1
jax: 0.10.0
libtpu: 0.0.40
codegen_flags: <defaults>
</compile_context>

<pallas_src>
import jax
import jax.numpy as jnp
from jax.experimental import pallas as pl
from jax.experimental.pallas import tpu as pltpu


def _round_up(x, m):
    return (x + m - 1) // m * m


def _gelu(x):
    # tanh-approximate GELU (EUP-friendly on TPU)
    c = jnp.float32(0.7978845608028654)  # sqrt(2/pi)
    return 0.5 * x * (1.0 + jnp.tanh(c * (x + 0.044715 * x * x * x)))


# ----------------------------------------------------------------------------
# MLM kernel: grid = (token_blocks, vocab_blocks)
# ----------------------------------------------------------------------------
def mlm_head_kernel(x_ref, tgt_ref, w1_ref, b1_ref, g_ref, beta_ref,
                    w2_ref, b2_ref,
                    logits_ref, loss_ref, valid_ref,
                    h_ref, m_ref, l_ref, t_ref):
    """BertLMPredictionHead-style MLM head.

    transform:  dense(H->H, bf16 MXU) -> GELU -> LayerNorm  (computed once per
                token block at vocab step 0, cached in h_ref scratch)
    decoder:    dense(H->tv, bf16 MXU) + bias, one vocab tile per grid step
    loss:       online log-sum-exp cross entropy, ignore_index = -1, reduced
                in-kernel to per-token-block (loss_sum, valid_count)
    """
    j = pl.program_id(1)
    nv = pl.num_programs(1)

    # ---- transform + scratch init: only once per token block --------------
    @pl.when(j == 0)
    def _():
        x = x_ref[...]                                           # bf16 (tb, H)
        h = jnp.dot(x, w1_ref[...], preferred_element_type=jnp.float32)
        h = h + b1_ref[...]
        h = _gelu(h)
        mu = jnp.mean(h, axis=-1, keepdims=True)
        var = jnp.mean(jnp.square(h - mu), axis=-1, keepdims=True)
        h = (h - mu) * jax.lax.rsqrt(var + 1e-12) * g_ref[...] + beta_ref[...]
        h_ref[...] = h.astype(h_ref.dtype)                       # cache bf16
        m_ref[...] = jnp.full_like(m_ref, -jnp.inf)
        l_ref[...] = jnp.zeros_like(l_ref)
        t_ref[...] = jnp.zeros_like(t_ref)

    # ---- decoder for the current vocab tile --------------------------------
    logits = jnp.dot(h_ref[...], w2_ref[...],
                     preferred_element_type=jnp.float32) + b2_ref[...]
    logits_ref[...] = logits.astype(logits_ref.dtype)            # lane-dense

    tb, tv = logits.shape

    # ---- online softmax statistics ------------------------------------------
    m_prev = m_ref[...]
    m_new = jnp.maximum(m_prev, jnp.max(logits, axis=-1, keepdims=True))
    alpha = jnp.exp(m_prev - m_new)
    p_sum = jnp.sum(jnp.exp(logits - m_new), axis=-1, keepdims=True)
    l_ref[...] = l_ref[...] * alpha + p_sum
    m_ref[...] = m_new

    # ---- target logit: accumulate only on the tile containing the target ----
    tgt = tgt_ref[...]                                           # (tb, 1) i32
    local = tgt - j * tv                                         # -1 stays < 0
    col = jax.lax.broadcasted_iota(jnp.int32, (tb, tv), 1)
    hit = col == local
    t_ref[...] += jnp.sum(jnp.where(hit, logits, 0.0), axis=-1, keepdims=True)

    # ---- finalize on the last vocab tile -------------------------------------
    @pl.when(j == nv - 1)
    def _():
        valid = (tgt >= 0).astype(jnp.float32)                   # ignore -1
        lse = m_ref[...] + jnp.log(l_ref[...])
        loss_tok = (lse - t_ref[...]) * valid
        loss_ref[...] = jnp.full(loss_ref.shape, jnp.sum(loss_tok), jnp.float32)
        valid_ref[...] = jnp.full(valid_ref.shape, jnp.sum(valid), jnp.float32)


def mlm_head_apply(embed, targets, params, *,
                   token_block=256, vocab_block=2048,
                   logits_dtype=jnp.bfloat16):
    """embed: [B, L, H] float; targets: [B, L] int32 (-1 = ignore)."""
    assert vocab_block % 128 == 0
    B, L, H = embed.shape
    V = params["w2"].shape[1]
    N = B * L

    # token tiling (pad rows with target=-1 so they are ignored)
    tb = min(token_block, _round_up(N, 8))
    Np = _round_up(N, tb)
    nb = Np // tb

    # vocab tiling (pad columns with bias -1e30 so they never win the softmax)
    tv = min(vocab_block, _round_up(V, 128))
    Vp = _round_up(V, tv)
    nv = Vp // tv

    x = embed.reshape(N, H).astype(jnp.bfloat16)
    x = jnp.pad(x, ((0, Np - N), (0, 0)))
    tgt = targets.reshape(N, 1).astype(jnp.int32)
    tgt = jnp.pad(tgt, ((0, Np - N), (0, 0)), constant_values=-1)

    w1 = params["w1"].astype(jnp.bfloat16)
    b1 = params["b1"].astype(jnp.float32)
    gamma = params["gamma"].astype(jnp.float32)
    beta = params["beta"].astype(jnp.float32)
    w2 = jnp.pad(params["w2"].astype(jnp.bfloat16), ((0, 0), (0, Vp - V)))
    b2 = jnp.pad(params["b2"].astype(jnp.float32), ((0, 0), (0, Vp - V)),
                 constant_values=-1e30)

    const = lambda shape: pl.BlockSpec(shape, lambda i, j: (0, 0))

    logits, loss_sums, valid_sums = pl.pallas_call(
        mlm_head_kernel,
        out_shape=(jax.ShapeDtypeStruct((Np, Vp), logits_dtype),
                   jax.ShapeDtypeStruct((nb, 1, 128), jnp.float32),
                   jax.ShapeDtypeStruct((nb, 1, 128), jnp.float32)),
        grid_spec=pltpu.PrefetchScalarGridSpec(
            num_scalar_prefetch=0,
            grid=(nb, nv),
            in_specs=[pl.BlockSpec((tb, H), lambda i, j: (i, 0)),   # x
                      pl.BlockSpec((tb, 1), lambda i, j: (i, 0)),   # targets
                      const((H, H)),                                # w1
                      const((1, H)),                                # b1
                      const((1, H)),                                # gamma
                      const((1, H)),                                # beta
                      pl.BlockSpec((H, tv), lambda i, j: (0, j)),   # w2 tile
                      pl.BlockSpec((1, tv), lambda i, j: (0, j))],  # b2 tile
            out_specs=[pl.BlockSpec((tb, tv), lambda i, j: (i, j)),
                       pl.BlockSpec((1, 1, 128), lambda i, j: (i, 0, 0)),
                       pl.BlockSpec((1, 1, 128), lambda i, j: (i, 0, 0))],
            scratch_shapes=[pltpu.VMEM((tb, H), jnp.bfloat16),   # cached h
                            pltpu.VMEM((tb, 1), jnp.float32),    # running max
                            pltpu.VMEM((tb, 1), jnp.float32),    # running sum
                            pltpu.VMEM((tb, 1), jnp.float32)]),  # target logit
        compiler_params=pltpu.CompilerParams(
            dimension_semantics=("parallel", "arbitrary"),
            vmem_limit_bytes=48 * 1024 * 1024),
    )(x, tgt, w1, b1, gamma, beta, w2, b2)

    loss_sum = jnp.sum(loss_sums[:, 0, 0])
    valid_sum = jnp.sum(valid_sums[:, 0, 0])
    # NOTE: PyTorch CrossEntropyLoss(ignore_index=-1, reduction='mean') gives
    # NaN when no token is valid; we return 0.0 in that degenerate case.
    loss_mean = loss_sum / jnp.maximum(valid_sum, 1.0)

    logits = logits[:N, :V].reshape(B, L, V)
    return {"logits": logits, "loss": loss_mean}


# ----------------------------------------------------------------------------
# ITM head: negligible flops (B x H x H) -> plain XLA (a dedicated pallas_call
# would be dominated by launch/DMA overhead and sub-(8,128) masked stores for
# B=2 / 2-class logits).
# ----------------------------------------------------------------------------
def itm_head_apply(cap_enc_embed, itm_label, params):
    """cap_enc_embed: [B, Lc, H]; itm_label: [B] int32."""
    pooled_in = cap_enc_embed[:, 0, :].astype(jnp.float32)       # CLS pooling
    pooled = jnp.tanh(pooled_in @ params["wp"].astype(jnp.float32)
                      + params["bp"].astype(jnp.float32))
    logits = pooled @ params["wc"].astype(jnp.float32) + params["bc"].astype(jnp.float32)
    logp = jax.nn.log_softmax(logits, axis=-1)
    tgt = itm_label.astype(jnp.int32)
    nll = -jnp.take_along_axis(logp, tgt[:, None], axis=-1)[:, 0]
    return {"logits": logits, "loss": jnp.mean(nll)}


# ----------------------------------------------------------------------------
# Forward pass mirroring UnivlPretrainHeads.forward
# ----------------------------------------------------------------------------
def univl_pretrain_heads_forward(visual_enc_embed, ocr_enc_embed,
                                 cap_enc_embed, text_enc_embed,
                                 dec_output, head_output,
                                 img_input, ocr_input,
                                 caption_output, sample_list, params):
    """Mirrors UnivlPretrainHeads.forward with detr_head=None, generation_head=None."""
    # 1) text-encoder MLM
    text_encoder_mlm_targets = jnp.concatenate(
        [sample_list["caption_lm_label_ids"], sample_list["ocr_lm_label_ids"]],
        axis=-1)
    text_encoder_mlm_output = mlm_head_apply(
        text_enc_embed, text_encoder_mlm_targets, params["text_encoder_mlm"])

    # 2) cross-modal MLM (targets of non-matching pairs are fully ignored)
    transformer_mlm_embed = jnp.concatenate([cap_enc_embed, ocr_enc_embed],
                                            axis=1)
    transformer_mlm_targets = jnp.where(
        (sample_list["itm_label"] == 0)[:, None],
        jnp.full_like(text_encoder_mlm_targets, -1),
        text_encoder_mlm_targets)
    transformer_mlm_output = mlm_head_apply(
        transformer_mlm_embed, transformer_mlm_targets,
        params["transformer_mlm"])

    # 3) image-text matching
    image_ocr_match_output = itm_head_apply(
        cap_enc_embed, sample_list["itm_label"], params["itm"])

    # 4) detr_head is None, 5) generation_head is None -> outputs dropped.
    # TODO(synk): Hungarian-matching DETR loss and autoregressive generation
    #             loss are host/loop-heavy and are skipped (heads are None).
    output = [text_encoder_mlm_output, transformer_mlm_output,
              image_ocr_match_output, None, None]
    return [o for o in output if o is not None]


# ----------------------------------------------------------------------------
# Pure-JAX reference (same GELU / LayerNorm definitions) for a sanity check
# ----------------------------------------------------------------------------
def mlm_head_reference(embed, targets, params):
    B, L, H = embed.shape
    x = embed.reshape(B * L, H).astype(jnp.float32)
    h = x @ params["w1"].astype(jnp.float32) + params["b1"].astype(jnp.float32)
    h = _gelu(h)
    mu = jnp.mean(h, axis=-1, keepdims=True)
    var = jnp.mean(jnp.square(h - mu), axis=-1, keepdims=True)
    h = (h - mu) * jax.lax.rsqrt(var + 1e-12) * params["gamma"] + params["beta"]
    logits = h @ params["w2"].astype(jnp.float32) + params["b2"].astype(jnp.float32)
    tgt = targets.reshape(-1)
    logp = jax.nn.log_softmax(logits, axis=-1)
    safe_tgt = jnp.maximum(tgt, 0)
    nll = -jnp.take_along_axis(logp, safe_tgt[:, None], axis=-1)[:, 0]
    valid = (tgt >= 0).astype(jnp.float32)
    loss = jnp.sum(nll * valid) / jnp.maximum(jnp.sum(valid), 1.0)
    V = params["w2"].shape[1]
    return {"logits": logits.reshape(B, L, V), "loss": loss}


# ----------------------------------------------------------------------------
# Deterministic parameter init + demo
# ----------------------------------------------------------------------------
def init_params(key, hidden, vocab):
    ks = jax.random.split(key, 8)

    def mlm(k0, k1):
        return {"w1": 0.02 * jax.random.normal(k0, (hidden, hidden), jnp.float32),
                "b1": jnp.zeros((1, hidden), jnp.float32),
                "gamma": jnp.ones((1, hidden), jnp.float32),
                "beta": jnp.zeros((1, hidden), jnp.float32),
                "w2": 0.02 * jax.random.normal(k1, (hidden, vocab), jnp.float32),
                "b2": jnp.zeros((1, vocab), jnp.float32)}

    itm = {"wp": 0.02 * jax.random.normal(ks[4], (hidden, hidden), jnp.float32),
           "bp": jnp.zeros((1, hidden), jnp.float32),
           "wc": 0.02 * jax.random.normal(ks[5], (hidden, 2), jnp.float32),
           "bc": jnp.zeros((1, 2), jnp.float32)}

    return {"text_encoder_mlm": mlm(ks[0], ks[1]),
            "transformer_mlm": mlm(ks[2], ks[3]),
            "itm": itm}


if __name__ == "__main__":
    B, Lc, Lo, H, V = 2, 8, 8, 32, 64
    key = jax.random.PRNGKey(0)
    k = jax.random.split(key, 10)

    cap_enc_embed = jax.random.normal(k[0], (B, Lc, H), jnp.float32)
    ocr_enc_embed = jax.random.normal(k[1], (B, Lo, H), jnp.float32)
    text_enc_embed = jax.random.normal(k[2], (B, Lc + Lo, H), jnp.float32)
    visual_enc_embed = jax.random.normal(k[3], (B, 4, H), jnp.float32)  # unused

    # lm label ids: mostly -1 (ignore), a few masked positions with real ids
    cap_lm = jnp.full((B, Lc), -1, jnp.int32).at[:, 1].set(
        jax.random.randint(k[4], (B,), 0, V))
    ocr_lm = jnp.full((B, Lo), -1, jnp.int32).at[:, 2].set(
        jax.random.randint(k[5], (B,), 0, V))
    itm_label = jnp.array([1, 0], jnp.int32)

    sample_list = {"caption_lm_label_ids": cap_lm,
                   "ocr_lm_label_ids": ocr_lm,
                   "itm_label": itm_label}
    params = init_params(k[6], H, V)

    outputs = univl_pretrain_heads_forward(
        visual_enc_embed, ocr_enc_embed, cap_enc_embed, text_enc_embed,
        dec_output=None, head_output={}, img_input=None, ocr_input=None,
        caption_output=None, sample_list=sample_list, params=params)

    outputs = jax.block_until_ready(outputs)
    assert len(outputs) == 3
    for out in outputs:
        assert bool(jnp.isfinite(out["loss"]))
        assert bool(jnp.all(jnp.isfinite(out["logits"].astype(jnp.float32))))

    # sanity check against a pure-JAX f32 reference (loose tolerance: kernel
    # runs the MXU path in bf16)
    tgt_all = jnp.concatenate([cap_lm, ocr_lm], axis=-1)
    ref = mlm_head_reference(text_enc_embed, tgt_all, params["text_encoder_mlm"])
    assert bool(jnp.allclose(outputs[0]["loss"], ref["loss"], rtol=5e-2, atol=5e-2))
    assert bool(jnp.allclose(outputs[0]["logits"].astype(jnp.float32),
                             ref["logits"], rtol=1e-1, atol=5e-2))

    print("KERNEL_OK")
</pallas_src>

<mosaic_0001>
module attributes {stable_mosaic.version = 11 : i64} {
  func.func @mlm_head_kernel(%arg0: i32, %arg1: i32, %arg2: memref<32x32xbf16, #tpu.memory_space<vmem>>, %arg3: memref<32x1xi32, #tpu.memory_space<vmem>>, %arg4: memref<32x32xbf16, #tpu.memory_space<vmem>>, %arg5: memref<1x32xf32, #tpu.memory_space<vmem>>, %arg6: memref<1x32xf32, #tpu.memory_space<vmem>>, %arg7: memref<1x32xf32, #tpu.memory_space<vmem>>, %arg8: memref<32x128xbf16, #tpu.memory_space<vmem>>, %arg9: memref<1x128xf32, #tpu.memory_space<vmem>>, %arg10: memref<32x128xbf16, #tpu.memory_space<vmem>>, %arg11: memref<1x1x128xf32, #tpu.memory_space<vmem>>, %arg12: memref<1x1x128xf32, #tpu.memory_space<vmem>>, %arg13: memref<32x32xbf16, #tpu.memory_space<vmem>>, %arg14: memref<32x1xf32, #tpu.memory_space<vmem>>, %arg15: memref<32x1xf32, #tpu.memory_space<vmem>>, %arg16: memref<32x1xf32, #tpu.memory_space<vmem>>) attributes {dimension_semantics = [#tpu.dimension_semantics<parallel>, #tpu.dimension_semantics<arbitrary>], iteration_bounds = array<i64: 1, 1>, scalar_prefetch = 0 : i64, scratch_operands = 4 : i64, tpu.core_type = #tpu.core_type<tc>, window_params = [{transform_indices = @transform_0, window_bounds = array<i64: 32, 32>}, {transform_indices = @transform_1, window_bounds = array<i64: 32, 1>}, {pipeline_mode = #tpu.pipeline_mode<synchronous>, transform_indices = @transform_2, window_bounds = array<i64: 32, 32>}, {pipeline_mode = #tpu.pipeline_mode<synchronous>, transform_indices = @transform_3, window_bounds = array<i64: 1, 32>}, {pipeline_mode = #tpu.pipeline_mode<synchronous>, transform_indices = @transform_4, window_bounds = array<i64: 1, 32>}, {pipeline_mode = #tpu.pipeline_mode<synchronous>, transform_indices = @transform_5, window_bounds = array<i64: 1, 32>}, {transform_indices = @transform_6, window_bounds = array<i64: 32, 128>}, {transform_indices = @transform_7, window_bounds = array<i64: 1, 128>}, {transform_indices = @transform_8, window_bounds = array<i64: 32, 128>}, {transform_indices = @transform_9, window_bounds = array<i64: 1, 1, 128>}, {transform_indices = @transform_10, window_bounds = array<i64: 1, 1, 128>}]} {
    %c0_i32 = arith.constant 0 : i32
    %0 = arith.cmpi eq, %arg1, %c0_i32 : i32
    %1 = arith.extui %0 : i1 to i32
    %c0_i32_0 = arith.constant 0 : i32
    %2 = arith.cmpi ne, %1, %c0_i32_0 : i32
    scf.if %2 {
      %c0_28 = arith.constant 0 : index
      %c0_29 = arith.constant 0 : index
      %44 = vector.load %arg2[%c0_28, %c0_29] : memref<32x32xbf16, #tpu.memory_space<vmem>>, vector<32x32xbf16>
      %c0_30 = arith.constant 0 : index
      %c0_31 = arith.constant 0 : index
      %45 = vector.load %arg4[%c0_30, %c0_31] : memref<32x32xbf16, #tpu.memory_space<vmem>>, vector<32x32xbf16>
      %cst_32 = arith.constant dense<0.000000e+00> : vector<32x32xf32>
      %46 = tpu.matmul %44, %45, %cst_32 {dimension_numbers = #tpu.dot_dimension_numbers<[1], [0], [0], [1], [0, 0, 1, 1], [], []>} : vector<32x32xbf16>, vector<32x32xbf16>, vector<32x32xf32> -> vector<32x32xf32>
      %c0_33 = arith.constant 0 : index
      %c0_34 = arith.constant 0 : index
      %47 = vector.load %arg5[%c0_33, %c0_34] : memref<1x32xf32, #tpu.memory_space<vmem>>, vector<1x32xf32>
      %48 = vector.broadcast %47 : vector<1x32xf32> to vector<32x32xf32>
      %49 = arith.addf %46, %48 : vector<32x32xf32>
      %cst_35 = arith.constant 5.000000e-01 : f32
      %50 = vector.broadcast %cst_35 : f32 to vector<32x32xf32>
      %51 = arith.mulf %50, %49 : vector<32x32xf32>
      %cst_36 = arith.constant 4.471500e-02 : f32
      %52 = vector.broadcast %cst_36 : f32 to vector<32x32xf32>
      %53 = arith.mulf %52, %49 : vector<32x32xf32>
      %54 = arith.mulf %53, %49 : vector<32x32xf32>
      %55 = arith.mulf %54, %49 : vector<32x32xf32>
      %56 = arith.addf %49, %55 : vector<32x32xf32>
      %cst_37 = arith.constant 0.797884583 : f32
      %57 = vector.broadcast %cst_37 : f32 to vector<32x32xf32>
      %58 = arith.mulf %57, %56 : vector<32x32xf32>
      %59 = math.tanh %58 : vector<32x32xf32>
      %cst_38 = arith.constant 1.000000e+00 : f32
      %60 = vector.broadcast %cst_38 : f32 to vector<32x32xf32>
      %61 = arith.addf %60, %59 : vector<32x32xf32>
      %62 = arith.mulf %51, %61 : vector<32x32xf32>
      %cst_39 = arith.constant dense<0.000000e+00> : vector<32xf32>
      %63 = vector.multi_reduction <add>, %62, %cst_39 [1] : vector<32x32xf32> to vector<32xf32>
      %64 = vector.shape_cast %63 : vector<32xf32> to vector<32x1xf32>
      %cst_40 = arith.constant 3.200000e+01 : f32
      %65 = vector.broadcast %cst_40 : f32 to vector<32x1xf32>
      %66 = arith.divf %64, %65 : vector<32x1xf32>
      %67 = vector.broadcast %66 : vector<32x1xf32> to vector<32x32xf32>
      %68 = arith.subf %62, %67 : vector<32x32xf32>
      %69 = arith.mulf %68, %68 : vector<32x32xf32>
      %cst_41 = arith.constant dense<0.000000e+00> : vector<32xf32>
      %70 = vector.multi_reduction <add>, %69, %cst_41 [1] : vector<32x32xf32> to vector<32xf32>
      %71 = vector.shape_cast %70 : vector<32xf32> to vector<32x1xf32>
      %cst_42 = arith.constant 3.200000e+01 : f32
      %72 = vector.broadcast %cst_42 : f32 to vector<32x1xf32>
      %73 = arith.divf %71, %72 : vector<32x1xf32>
      %74 = vector.broadcast %66 : vector<32x1xf32> to vector<32x32xf32>
      %75 = arith.subf %62, %74 : vector<32x32xf32>
      %cst_43 = arith.constant 9.99999996E-13 : f32
      %76 = vector.broadcast %cst_43 : f32 to vector<32x1xf32>
      %77 = arith.addf %73, %76 : vector<32x1xf32>
      %78 = math.rsqrt %77 : vector<32x1xf32>
      %79 = vector.broadcast %78 : vector<32x1xf32> to vector<32x32xf32>
      %80 = arith.mulf %75, %79 : vector<32x32xf32>
      %c0_44 = arith.constant 0 : index
      %c0_45 = arith.constant 0 : index
      %81 = vector.load %arg6[%c0_44, %c0_45] : memref<1x32xf32, #tpu.memory_space<vmem>>, vector<1x32xf32>
      %82 = vector.broadcast %81 : vector<1x32xf32> to vector<32x32xf32>
      %83 = arith.mulf %80, %82 : vector<32x32xf32>
      %c0_46 = arith.constant 0 : index
      %c0_47 = arith.constant 0 : index
      %84 = vector.load %arg7[%c0_46, %c0_47] : memref<1x32xf32, #tpu.memory_space<vmem>>, vector<1x32xf32>
      %85 = vector.broadcast %84 : vector<1x32xf32> to vector<32x32xf32>
      %86 = arith.addf %83, %85 : vector<32x32xf32>
      %87 = arith.truncf %86 : vector<32x32xf32> to vector<32x32xbf16>
      %c0_48 = arith.constant 0 : index
      %c0_49 = arith.constant 0 : index
      %88 = vector.load %arg13[%c0_48, %c0_49] : memref<32x32xbf16, #tpu.memory_space<vmem>>, vector<32x32xbf16>
      tpu.vector_store %arg13[%c0_48, %c0_49], %87 {strides = array<i32>} : memref<32x32xbf16, #tpu.memory_space<vmem>>, vector<32x32xbf16>,
      %cst_50 = arith.constant 0xFF800000 : f32
      %89 = vector.broadcast %cst_50 : f32 to vector<32x1xf32>
      %c0_51 = arith.constant 0 : index
      %c0_52 = arith.constant 0 : index
      %90 = vector.load %arg14[%c0_51, %c0_52] : memref<32x1xf32, #tpu.memory_space<vmem>>, vector<32x1xf32>
      tpu.vector_store %arg14[%c0_51, %c0_52], %89 {strides = array<i32>} : memref<32x1xf32, #tpu.memory_space<vmem>>, vector<32x1xf32>,
      %cst_53 = arith.constant 0.000000e+00 : f32
      %91 = vector.broadcast %cst_53 : f32 to vector<32x1xf32>
      %c0_54 = arith.constant 0 : index
      %c0_55 = arith.constant 0 : index
      %92 = vector.load %arg15[%c0_54, %c0_55] : memref<32x1xf32, #tpu.memory_space<vmem>>, vector<32x1xf32>
      tpu.vector_store %arg15[%c0_54, %c0_55], %91 {strides = array<i32>} : memref<32x1xf32, #tpu.memory_space<vmem>>, vector<32x1xf32>,
      %cst_56 = arith.constant 0.000000e+00 : f32
      %93 = vector.broadcast %cst_56 : f32 to vector<32x1xf32>
      %c0_57 = arith.constant 0 : index
      %c0_58 = arith.constant 0 : index
      %94 = vector.load %arg16[%c0_57, %c0_58] : memref<32x1xf32, #tpu.memory_space<vmem>>, vector<32x1xf32>
      tpu.vector_store %arg16[%c0_57, %c0_58], %93 {strides = array<i32>} : memref<32x1xf32, #tpu.memory_space<vmem>>, vector<32x1xf32>,
    } else {
    }
    %c0 = arith.constant 0 : index
    %c0_1 = arith.constant 0 : index
    %3 = vector.load %arg13[%c0, %c0_1] : memref<32x32xbf16, #tpu.memory_space<vmem>>, vector<32x32xbf16>
    %c0_2 = arith.constant 0 : index
    %c0_3 = arith.constant 0 : index
    %4 = vector.load %arg8[%c0_2, %c0_3] : memref<32x128xbf16, #tpu.memory_space<vmem>>, vector<32x128xbf16>
    %cst = arith.constant dense<0.000000e+00> : vector<32x128xf32>
    %5 = tpu.matmul %3, %4, %cst {dimension_numbers = #tpu.dot_dimension_numbers<[1], [0], [0], [1], [0, 0, 1, 1], [], []>} : vector<32x32xbf16>, vector<32x128xbf16>, vector<32x128xf32> -> vector<32x128xf32>
    %c0_4 = arith.constant 0 : index
    %c0_5 = arith.constant 0 : index
    %6 = vector.load %arg9[%c0_4, %c0_5] : memref<1x128xf32, #tpu.memory_space<vmem>>, vector<1x128xf32>
    %7 = vector.broadcast %6 : vector<1x128xf32> to vector<32x128xf32>
    %8 = arith.addf %5, %7 : vector<32x128xf32>
    %9 = arith.truncf %8 : vector<32x128xf32> to vector<32x128xbf16>
    %c0_6 = arith.constant 0 : index
    %c0_7 = arith.constant 0 : index
    %10 = vector.load %arg10[%c0_6, %c0_7] : memref<32x128xbf16, #tpu.memory_space<vmem>>, vector<32x128xbf16>
    tpu.vector_store %arg10[%c0_6, %c0_7], %9 {strides = array<i32>} : memref<32x128xbf16, #tpu.memory_space<vmem>>, vector<32x128xbf16>,
    %c0_8 = arith.constant 0 : index
    %c0_9 = arith.constant 0 : index
    %11 = vector.load %arg14[%c0_8, %c0_9] : memref<32x1xf32, #tpu.memory_space<vmem>>, vector<32x1xf32>
    %cst_10 = arith.constant dense<0xFF800000> : vector<32xf32>
    %12 = vector.multi_reduction <maximumf>, %8, %cst_10 [1] : vector<32x128xf32> to vector<32xf32>
    %13 = vector.shape_cast %12 : vector<32xf32> to vector<32x1xf32>
    %14 = arith.maximumf %11, %13 : vector<32x1xf32>
    %15 = arith.subf %11, %14 : vector<32x1xf32>
    %16 = math.exp %15 : vector<32x1xf32>
    %17 = vector.broadcast %14 : vector<32x1xf32> to vector<32x128xf32>
    %18 = arith.subf %8, %17 : vector<32x128xf32>
    %19 = math.exp %18 : vector<32x128xf32>
    %cst_11 = arith.constant dense<0.000000e+00> : vector<32xf32>
    %20 = vector.multi_reduction <add>, %19, %cst_11 [1] : vector<32x128xf32> to vector<32xf32>
    %21 = vector.shape_cast %20 : vector<32xf32> to vector<32x1xf32>
    %c0_12 = arith.constant 0 : index
    %c0_13 = arith.constant 0 : index
    %22 = vector.load %arg15[%c0_12, %c0_13] : memref<32x1xf32, #tpu.memory_space<vmem>>, vector<32x1xf32>
    %23 = arith.mulf %22, %16 : vector<32x1xf32>
    %24 = arith.addf %23, %21 : vector<32x1xf32>
    %c0_14 = arith.constant 0 : index
    %c0_15 = arith.constant 0 : index
    %25 = vector.load %arg15[%c0_14, %c0_15] : memref<32x1xf32, #tpu.memory_space<vmem>>, vector<32x1xf32>
    tpu.vector_store %arg15[%c0_14, %c0_15], %24 {strides = array<i32>} : memref<32x1xf32, #tpu.memory_space<vmem>>, vector<32x1xf32>,
    %c0_16 = arith.constant 0 : index
    %c0_17 = arith.constant 0 : index
    %26 = vector.load %arg14[%c0_16, %c0_17] : memref<32x1xf32, #tpu.memory_space<vmem>>, vector<32x1xf32>
    tpu.vector_store %arg14[%c0_16, %c0_17], %14 {strides = array<i32>} : memref<32x1xf32, #tpu.memory_space<vmem>>, vector<32x1xf32>,
    %c0_18 = arith.constant 0 : index
    %c0_19 = arith.constant 0 : index
    %27 = vector.load %arg3[%c0_18, %c0_19] : memref<32x1xi32, #tpu.memory_space<vmem>>, vector<32x1xi32>
    %c128_i32 = arith.constant 128 : i32
    %28 = arith.muli %arg1, %c128_i32 : i32
    %29 = vector.broadcast %28 : i32 to vector<32x1xi32>
    %30 = arith.subi %27, %29 : vector<32x1xi32>
    %31 = tpu.iota {dimensions = array<i32: 1>} : vector<32x128xi32>
    %32 = vector.broadcast %30 : vector<32x1xi32> to vector<32x128xi32>
    %33 = arith.cmpi eq, %31, %32 : vector<32x128xi32>
    %c0_20 = arith.constant 0 : index
    %c0_21 = arith.constant 0 : index
    %34 = vector.load %arg16[%c0_20, %c0_21] : memref<32x1xf32, #tpu.memory_space<vmem>>, vector<32x1xf32>
    %cst_22 = arith.constant 0.000000e+00 : f32
    %35 = vector.broadcast %cst_22 : f32 to vector<32x128xf32>
    %36 = arith.select %33, %8, %35 : vector<32x128xi1>, vector<32x128xf32>
    %cst_23 = arith.constant dense<0.000000e+00> : vector<32xf32>
    %37 = vector.multi_reduction <add>, %36, %cst_23 [1] : vector<32x128xf32> to vector<32xf32>
    %38 = vector.shape_cast %37 : vector<32xf32> to vector<32x1xf32>
    %39 = arith.addf %34, %38 : vector<32x1xf32>
    %c0_24 = arith.constant 0 : index
    %c0_25 = arith.constant 0 : index
    %40 = vector.load %arg16[%c0_24, %c0_25] : memref<32x1xf32, #tpu.memory_space<vmem>>, vector<32x1xf32>
    tpu.vector_store %arg16[%c0_24, %c0_25], %39 {strides = array<i32>} : memref<32x1xf32, #tpu.memory_space<vmem>>, vector<32x1xf32>,
    %c0_i32_26 = arith.constant 0 : i32
    %41 = arith.cmpi eq, %arg1, %c0_i32_26 : i32
    %42 = arith.extui %41 : i1 to i32
    %c0_i32_27 = arith.constant 0 : i32
    %43 = arith.cmpi ne, %42, %c0_i32_27 : i32
    scf.if %43 {
      %c0_i32_28 = arith.constant 0 : i32
      %44 = vector.broadcast %c0_i32_28 : i32 to vector<32x1xi32>
      %45 = arith.cmpi sge, %27, %44 : vector<32x1xi32>
      %46 = arith.extui %45 : vector<32x1xi1> to vector<32x1xi32>
      %47 = arith.sitofp %46 : vector<32x1xi32> to vector<32x1xf32>
      %c0_29 = arith.constant 0 : index
      %c0_30 = arith.constant 0 : index
      %48 = vector.load %arg14[%c0_29, %c0_30] : memref<32x1xf32, #tpu.memory_space<vmem>>, vector<32x1xf32>
      %c0_31 = arith.constant 0 : index
      %c0_32 = arith.constant 0 : index
      %49 = vector.load %arg15[%c0_31, %c0_32] : memref<32x1xf32, #tpu.memory_space<vmem>>, vector<32x1xf32>
      %50 = math.log %49 : vector<32x1xf32>
      %51 = arith.addf %48, %50 : vector<32x1xf32>
      %c0_33 = arith.constant 0 : index
      %c0_34 = arith.constant 0 : index
      %52 = vector.load %arg16[%c0_33, %c0_34] : memref<32x1xf32, #tpu.memory_space<vmem>>, vector<32x1xf32>
      %53 = arith.subf %51, %52 : vector<32x1xf32>
      %54 = arith.mulf %53, %47 : vector<32x1xf32>
      %55 = vector.shape_cast %54 : vector<32x1xf32> to vector<1x32x1xf32>
      %cst_35 = arith.constant dense<0.000000e+00> : vector<1xf32>
      %56 = vector.multi_reduction <add>, %55, %cst_35 [1, 2] : vector<1x32x1xf32> to vector<1xf32>
      %57 = vector.shape_cast %56 : vector<1xf32> to vector<1x1x1xf32>
      %58 = vector.extract %57[0, 0, 0] : f32 from vector<1x1x1xf32>
      %59 = vector.broadcast %58 : f32 to vector<1x1x128xf32>
      %c0_36 = arith.constant 0 : index
      %c0_37 = arith.constant 0 : index
      %c0_38 = arith.constant 0 : index
      %60 = vector.load %arg11[%c0_36, %c0_37, %c0_38] : memref<1x1x128xf32, #tpu.memory_space<vmem>>, vector<1x1x128xf32>
      tpu.vector_store %arg11[%c0_36, %c0_37, %c0_38], %59 {strides = array<i32>} : memref<1x1x128xf32, #tpu.memory_space<vmem>>, vector<1x1x128xf32>,
      %61 = vector.shape_cast %47 : vector<32x1xf32> to vector<1x32x1xf32>
      %cst_39 = arith.constant dense<0.000000e+00> : vector<1xf32>
      %62 = vector.multi_reduction <add>, %61, %cst_39 [1, 2] : vector<1x32x1xf32> to vector<1xf32>
      %63 = vector.shape_cast %62 : vector<1xf32> to vector<1x1x1xf32>
      %64 = vector.extract %63[0, 0, 0] : f32 from vector<1x1x1xf32>
      %65 = vector.broadcast %64 : f32 to vector<1x1x128xf32>
      %c0_40 = arith.constant 0 : index
      %c0_41 = arith.constant 0 : index
      %c0_42 = arith.constant 0 : index
      %66 = vector.load %arg12[%c0_40, %c0_41, %c0_42] : memref<1x1x128xf32, #tpu.memory_space<vmem>>, vector<1x1x128xf32>
      tpu.vector_store %arg12[%c0_40, %c0_41, %c0_42], %65 {strides = array<i32>} : memref<1x1x128xf32, #tpu.memory_space<vmem>>, vector<1x1x128xf32>,
    } else {
    }
    return
  }
  func.func @transform_0(%arg0: i32, %arg1: i32) -> (i32, i32) {
    %c0_i32 = arith.constant 0 : i32
    %c0_i32_0 = arith.constant 0 : i32
    return %arg0, %c0_i32 : i32, i32
  }
  func.func @transform_1(%arg0: i32, %arg1: i32) -> (i32, i32) {
    %c0_i32 = arith.constant 0 : i32
    %c0_i32_0 = arith.constant 0 : i32
    return %arg0, %c0_i32 : i32, i32
  }
  func.func @transform_2(%arg0: i32, %arg1: i32) -> (i32, i32) {
    %c0_i32 = arith.constant 0 : i32
    %c0_i32_0 = arith.constant 0 : i32
    %c0_i32_1 = arith.constant 0 : i32
    return %c0_i32, %c0_i32_0 : i32, i32
  }
  func.func @transform_3(%arg0: i32, %arg1: i32) -> (i32, i32) {
    %c0_i32 = arith.constant 0 : i32
    %c0_i32_0 = arith.constant 0 : i32
    %c0_i32_1 = arith.constant 0 : i32
    return %c0_i32, %c0_i32_0 : i32, i32
  }
  func.func @transform_4(%arg0: i32, %arg1: i32) -> (i32, i32) {
    %c0_i32 = arith.constant 0 : i32
    %c0_i32_0 = arith.constant 0 : i32
    %c0_i32_1 = arith.constant 0 : i32
    return %c0_i32, %c0_i32_0 : i32, i32
  }
  func.func @transform_5(%arg0: i32, %arg1: i32) -> (i32, i32) {
    %c0_i32 = arith.constant 0 : i32
    %c0_i32_0 = arith.constant 0 : i32
    %c0_i32_1 = arith.constant 0 : i32
    return %c0_i32, %c0_i32_0 : i32, i32
  }
  func.func @transform_6(%arg0: i32, %arg1: i32) -> (i32, i32) {
    %c0_i32 = arith.constant 0 : i32
    %c0_i32_0 = arith.constant 0 : i32
    return %c0_i32, %arg1 : i32, i32
  }
  func.func @transform_7(%arg0: i32, %arg1: i32) -> (i32, i32) {
    %c0_i32 = arith.constant 0 : i32
    %c0_i32_0 = arith.constant 0 : i32
    return %c0_i32, %arg1 : i32, i32
  }
  func.func @transform_8(%arg0: i32, %arg1: i32) -> (i32, i32) {
    %c0_i32 = arith.constant 0 : i32
    return %arg0, %arg1 : i32, i32
  }
  func.func @transform_9(%arg0: i32, %arg1: i32) -> (i32, i32, i32) {
    %c0_i32 = arith.constant 0 : i32
    %c0_i32_0 = arith.constant 0 : i32
    %c0_i32_1 = arith.constant 0 : i32
    return %arg0, %c0_i32, %c0_i32_0 : i32, i32, i32
  }
  func.func @transform_10(%arg0: i32, %arg1: i32) -> (i32, i32, i32) {
    %c0_i32 = arith.constant 0 : i32
    %c0_i32_0 = arith.constant 0 : i32
    %c0_i32_1 = arith.constant 0 : i32
    return %arg0, %c0_i32, %c0_i32_0 : i32, i32, i32
  }
}

</mosaic_0001>

<bundles_post_ra>
// kernel: tpu_custom_call.1
= control target key start
LH: loop header
LB: loop body
LE: loop exit
PB: predicated region body
PF: predicated region fallthrough
CT: control target
= control target key end

     0   :  { %16 = vsyncpa [#allocation7], 0  ;;  %s1210_s0 = inlined_call_operand.vmem [shape: bf16[32,32], index: 0, kind: input, shape index: {}]   ;;  %s1211_s1 = inlined_call_operand.vmem [shape: s32[32,1], index: 1, kind: input, shape index: {}]   ;;  %s1212_s2 = inlined_call_operand.vmem [shape: bf16[32,32], index: 2, kind: input, shape index: {}]   ;;  %s1213_s3 = inlined_call_operand.hbm [shape: f32[1,32], index: 3, kind: input, shape index: {}]   ;;  %s1214_s4 = inlined_call_operand.hbm [shape: f32[1,32], index: 4, kind: input, shape index: {}]   ;;  %s1215_s5 = inlined_call_operand.vmem [shape: f32[1,32], index: 5, kind: input, shape index: {}]   ;;  %s1216_s6 = inlined_call_operand.vmem [shape: bf16[32,128], index: 6, kind: input, shape index: {}]   ;;  %s1217_s7 = inlined_call_operand.vmem [shape: f32[1,128], index: 7, kind: input, shape index: {}]   ;;  %s1218_s8 = inlined_call_operand.hbm [shape: bf16[32,128], index: 8, kind: output, shape index: {0}]   ;;  %s1219_s9 = inlined_call_operand.hbm [shape: f32[1,1,128], index: 9, kind: output, shape index: {1}]   ;;  %s1220_s10 = inlined_call_operand.hbm [shape: f32[1,1,128], index: 10, kind: output, shape index: {2}]  }
   0x1   :  { %17 = vsyncpa [#allocation10], 0 }
   0x2   :  { %18 = vsyncpa [#allocation8], 0 }
   0x3   :  { %19 = vsyncpa [#allocation13], 0  ;;  %s895_s13 = smov [#allocation6]   ;;  %s896_s15 = smov [#allocation9]  }
   0x4   :  { %s32_s14 = sshll.u32 %s895_s13, 4  ;;  %s42_s16 = sshll.u32 %s896_s15, 4  ;;  %s33_s14 = int_to_ptr.vmem [resolvable:$true] %s32_s14  ;;  %s43_s16 = int_to_ptr.vmem [resolvable:$true] %s42_s16 }
   0x5   :  { %s777_s19 = scalar_lea.hbm %s1213_s3, 16 }
   0x6   :  { %p778_p0 = scmp.ne.s32.totalorder %s1213_s3, %s777_s19  ;;  %p781_p1 = scmp.lt.u32.totalorder %s777_s19, %s1213_s3 }
   0x8   :  { %p783_p2 = pnand %p781_p1, %p778_p0 }
   0xa   :  { %786 = shalt.err (!%p783_p2)
}
   0xb   :  { %s787_s24 = scalar_lea.vmem %s33_s14, 16  ;;  %s791_s25 = scalar_lea.vmem %s33_s14, 32 }
   0xc   :  { %p788_p3 = scmp.ne.s32.totalorder %s33_s14, %s787_s24  ;;  %p792_p4 = scmp.lt.s32.totalorder %s33_s14, %s33_s14 }
   0xd   :  { %p793_p5 = scmp.lt.s32.totalorder %s791_s25, %s787_s24 }
   0xf   :  { %p794_p6 = por %p793_p5, %p792_p4 }
  0x11   :  { %p795_p7 = pnand %p794_p6, %p788_p3 }
  0x13   :  { %798 = shalt.err (!%p795_p7)
}
  0x14   :  { %35 = dma.hbm_to_vmem [thread:$0]  %s1213_s3, 16, %s33_s14, [#allocation7]  }
  0x15   :  { %s799_s30 = scalar_lea.hbm %s1214_s4, 16 }
  0x16   :  { %p800_p8 = scmp.ne.s32.totalorder %s1214_s4, %s799_s30  ;;  %p803_p9 = scmp.lt.u32.totalorder %s799_s30, %s1214_s4 }
  0x18   :  { %p805_p10 = pnand %p803_p9, %p800_p8 }
  0x1a   :  { %808 = shalt.err (!%p805_p10)
}
  0x1b   :  { %s809_s17 = scalar_lea.vmem %s43_s16, 16  ;;  %s813_s18 = scalar_lea.vmem %s43_s16, 32 }
  0x1c   :  { %p810_p11 = scmp.ne.s32.totalorder %s43_s16, %s809_s17  ;;  %p814_p12 = scmp.lt.s32.totalorder %s43_s16, %s43_s16 }
  0x1d   :  { %p815_p13 = scmp.lt.s32.totalorder %s813_s18, %s809_s17 }
  0x1f   :  { %p816_p0 = por %p815_p13, %p814_p12 }
  0x21   :  { %p817_p1 = pnand %p816_p0, %p810_p11 }
  0x23   :  { %820 = shalt.err (!%p817_p1)
}
  0x24   :  { %45 = dma.hbm_to_vmem [thread:$0]  %s1214_s4, 16, %s43_s16, [#allocation10]  }
  0x25   :  { %887 = dma.done.wait [#allocation7], 16  }
  0x26   :  { %888 = vsyncadd [#allocation7], 4294967280 }
  0x27   :  { %889 = dma.done.wait [#allocation10], 16  }
  0x28   :  { %890 = vsyncadd [#allocation10], 4294967280  ;;  %v731_v0 = vld [vmem:[%s1212_s2] sm:$0xff]   ;;  %v732_v1 = vld [vmem:[%s1212_s2 + $0x8] sm:$0xff]   ;;  %vm100_vm0 = vcmask 261120   ;;  %vm271_vm1 = vcmask 7168  }
  0x29   :  { %699 = vmatprep.subr.bf16.mxu0 %v731_v0  ;;  %v733_v2 = vld [vmem:[%s1210_s0] sm:$0xff]   ;;  %v734_v3 = vld [vmem:[%s1210_s0 + $0x8] sm:$0xff]   ;;  %v654_v4 = vld [vmem:[#allocation6] ss:$0 sm:$0xff] }
  0x2a   :  { %700 = vmatpush3.bf16.msra.mxu0 %v731_v0  ;;  %703 = vmatprep.mubr.msk.bf16.mxu0 %vm100_vm0, %v733_v2 }
  0x2b   :  { %701 = vmatprep.subr.bf16.mxu0 %v732_v1 }
  0x2e   :  { %702 = vmatpush3.bf16.msra.mxu0 %v732_v1 }
  0x31   :  { %704 = vmatmul.mubr.msk.bf16.vlgmr.msra.gmra.mrb[0].mxu0 %vm100_vm0, %v734_v3 }
 0x104   :  { %v705_v5 = vpop.f32.mrb[0].mxu0 }
 0x105   :  { %v150_v6 = vadd.f32 %v705_v5, %v654_v4  ;;  %v141_v7 = vpop.f32.mrb[1].mxu0 }
 0x106   :  { %v142_v8 = vadd.f32 %v654_v4, %v141_v7  ;;  %v706_v9 = vpop.f32.mrb[2].mxu0 }
 0x107   :  { %v162_v10 = vmul.f32 0.044715, %v150_v6  ;;  %v153_v11 = vadd.f32 %v706_v9, %v654_v4  ;;  %v144_v12 = vpop.f32.mrb[3].mxu0  ;;  %v158_v35 = vmul.f32 0.5, %v150_v6  ;;  %v735_v9 = vld [vmem:[%s1216_s6] sm:$0xff]  }
 0x108   :  { %v160_v13 = vmul.f32 0.044715, %v142_v8  ;;  %v145_v14 = vadd.f32 %v654_v4, %v144_v12  ;;  %v156_v38 = vmul.f32 0.5, %v142_v8  ;;  %707 = vmatprep.subr.bf16.mxu1 %v735_v9 }
 0x109   :  { %v163_v15 = vmul.f32 0.044715, %v153_v11  ;;  %v166_v16 = vmul.f32 %v162_v10, %v150_v6  ;;  %v159_v42 = vmul.f32 0.5, %v153_v11  ;;  %v736_v10 = vld [vmem:[%s1216_s6 + $0x8] sm:$0xff]   ;;  %708 = vmatpush3.bf16.msra.mxu1 %v735_v9 }
 0x10a   :  { %v161_v17 = vmul.f32 0.044715, %v145_v14  ;;  %v164_v18 = vmul.f32 %v160_v13, %v142_v8  ;;  %v157_v45 = vmul.f32 0.5, %v145_v14  ;;  %709 = vmatprep.subr.bf16.mxu1 %v736_v10 }
 0x10b   :  { %v170_v19 = vmul.f32 %v166_v16, %v150_v6  ;;  %v167_v20 = vmul.f32 %v163_v15, %v153_v11 }
 0x10c   :  { %v168_v21 = vmul.f32 %v164_v18, %v142_v8  ;;  %v165_v22 = vmul.f32 %v161_v17, %v145_v14 }
 0x10d   :  { %v174_v23 = vadd.f32 %v170_v19, %v150_v6  ;;  %v171_v24 = vmul.f32 %v167_v20, %v153_v11  ;;  %710 = vmatpush3.bf16.msra.mxu1 %v736_v10 }
 0x10e   :  { %v172_v25 = vadd.f32 %v168_v21, %v142_v8  ;;  %v169_v26 = vmul.f32 %v165_v22, %v145_v14 }
 0x10f   :  { %v178_v27 = vmul.f32 0.7978846, %v174_v23  ;;  %v175_v28 = vadd.f32 %v171_v24, %v153_v11 }
 0x110   :  { %v176_v29 = vmul.f32 0.7978846, %v172_v25  ;;  %v173_v30 = vadd.f32 %v169_v26, %v145_v14  ;;  %v661_v25 = vld [vmem:[#allocation9] ss:$0 sm:$0xff] }
 0x111   :  { %737 = vtanh.f32 %v178_v27  ;;  %v179_v31 = vmul.f32 0.7978846, %v175_v28 }
 0x112   :  { %739 = vtanh.f32 %v176_v29  ;;  %v177_v32 = vmul.f32 0.7978846, %v173_v30  ;;  %v662_v30 = vld [vmem:[%s1215_s5] ss:$0 sm:$0xff] }
 0x113   :  { %741 = vtanh.f32 %v179_v31 }
 0x114   :  { %743 = vtanh.f32 %v177_v32 }
 0x11b   :  { %v738_v33 = vpop.eup %737 }
 0x11c   :  { %v740_v34 = vpop.eup %739  ;;  %v186_v36 = vadd.f32 1.0, %v738_v33 }
 0x11d   :  { %v742_v37 = vpop.eup %741  ;;  %v184_v39 = vadd.f32 1.0, %v740_v34 }
 0x11e   :  { %v744_v40 = vpop.eup %743  ;;  %v190_v41 = vmul.f32 %v186_v36, %v158_v35  ;;  %v187_v43 = vadd.f32 1.0, %v742_v37 }
 0x11f   :  { %v188_v44 = vmul.f32 %v184_v39, %v156_v38  ;;  %v185_v46 = vadd.f32 1.0, %v744_v40 }
 0x120   :  { %v198_v47 = vsel %vm100_vm0, %v190_v41, 0.0  ;;  %v191_v48 = vmul.f32 %v187_v43, %v159_v42 }
 0x121   :  { %199 = vadd.xlane.f32.xlu1 %v198_v47  ;;  %v192_v49 = vsel %vm100_vm0, %v188_v44, 0.0  ;;  %v189_v50 = vmul.f32 %v185_v46, %v157_v45  ;;  %v897_v45 = vmov -inf   ;;  %v663_v46 = vld [vmem:[%s1217_s7] ss:$0 sm:$0xff] }
 0x122   :  { %193 = vadd.xlane.f32.xlu0 %v192_v49  ;;  %v201_v51 = vsel %vm100_vm0, %v191_v48, 0.0  ;;  %272 = vst.msk [vmem:[#allocation3] sm:$0xff] %vm271_vm1, %v897_v45  ;;  %273 = vst.msk [vmem:[#allocation3 + $0x8] sm:$0xff] %vm271_vm1, %v897_v45 }
 0x123   :  { %v195_v52 = vsel %vm100_vm0, %v189_v50, 0.0  ;;  %274 = vst.msk [vmem:[#allocation3 + $0x10] sm:$0xff] %vm271_vm1, %v897_v45  ;;  %275 = vst.msk [vmem:[#allocation3 + $0x18] sm:$0xff] %vm271_vm1, %v897_v45 }
 0x125   :  { %202 = vadd.xlane.f32.xlu1 %v201_v51 }
 0x126   :  { %196 = vadd.xlane.f32.xlu0 %v195_v52 }
 0x1ae   :  { %v200_v53 = vpop.xlane.xlu1 %199 }
 0x1af   :  { %v207_v54 = vmul.f32 0.03125, %v200_v53  ;;  %v194_v55 = vpop.xlane.xlu0 %193 }
 0x1b0   :  { %v205_v56 = vmul.f32 0.03125, %v194_v55 }
 0x1b1   :  { %v211_v57 = vsub.f32 %v190_v41, %v207_v54 }
 0x1b2   :  { %v209_v58 = vsub.f32 %v188_v44, %v205_v56  ;;  %v203_v59 = vpop.xlane.xlu1 %202 }
 0x1b3   :  { %v208_v60 = vmul.f32 0.03125, %v203_v59  ;;  %v197_v61 = vpop.xlane.xlu0 %196  ;;  %v215_v3 = vmul.f32 %v211_v57, %v211_v57  ;;  %v1058_v59 = vld [vmem:[#allocation3] sm:$0xff] }
 0x1b4   :  { %v206_v62 = vmul.f32 0.03125, %v197_v61  ;;  %v213_v63 = vmul.f32 %v209_v58, %v209_v58  ;;  %v1060_v61 = vld [vmem:[#allocation3 + $0x8] sm:$0xff] }
 0x1b5   :  { %v212_v0 = vsub.f32 %v191_v48, %v208_v60  ;;  %v223_v5 = vsel %vm100_vm0, %v215_v3, 0.0 }
 0x1b6   :  { %v210_v1 = vsub.f32 %v189_v50, %v206_v62  ;;  %v217_v2 = vsel %vm100_vm0, %v213_v63, 0.0 }
 0x1b7   :  { %218 = vadd.xlane.f32.xlu0 %v217_v2  ;;  %v216_v7 = vmul.f32 %v212_v0, %v212_v0 }
 0x1b8   :  { %v214_v4 = vmul.f32 %v210_v1, %v210_v1 }
 0x1b9   :  { %v226_v8 = vsel %vm100_vm0, %v216_v7, 0.0 }
 0x1ba   :  { %v220_v6 = vsel %vm100_vm0, %v214_v4, 0.0  ;;  %v1075_v4 = vld [vmem:[#allocation3 + $0x18] sm:$0xff] }
 0x1bb   :  { %224 = vadd.xlane.f32.xlu0 %v223_v5  ;;  %221 = vadd.xlane.f32.xlu1 %v220_v6 }
 0x1bf   :  { %227 = vadd.xlane.f32.xlu1 %v226_v8 }
 0x244   :  { %v219_v11 = vpop.xlane.xlu0 %218 }
 0x245   :  { %v229_v12 = vmul.f32 0.03125, %v219_v11  ;;  %v474_v11 = vld [vmem:[%s1211_s1] sm:$0xff] }
 0x246   :  { %vm529_vm7 = vcmp.ge.s32.totalorder %v474_v11, 0 }
 0x247   :  { %v233_v13 = vadd.f32 1e-12, %v229_v12  ;;  %v475_v12 = vld [vmem:[%s1211_s1 + $0x8] sm:$0xff] }
 0x248   :  { %v222_v14 = vpop.xlane.xlu1 %221  ;;  %v225_v15 = vpop.xlane.xlu0 %224  ;;  %vm530_vm6 = vcmp.ge.s32.totalorder %v475_v12, 0 }
 0x249   :  { %745 = vrsqrt.f32 %v233_v13  ;;  %v230_v16 = vmul.f32 0.03125, %v222_v14  ;;  %v231_v17 = vmul.f32 0.03125, %v225_v15  ;;  %v476_v13 = vld [vmem:[%s1211_s1 + $0x10] sm:$0xff]  ;;  %v477_v14 = vld [vmem:[%s1211_s1 + $0x18] sm:$0xff]  ;;  %s900_s1 = smov [#allocation11]  }
 0x24a   :  { %vm531_vm8 = vcmp.ge.s32.totalorder %v476_v13, 0  ;;  %vm532_vm9 = vcmp.ge.s32.totalorder %v477_v14, 0  ;;  %s614_s18 = sshll.u32 %s900_s1, 4  ;;  %s615_s18 = int_to_ptr.vmem [resolvable:$true] %s614_s18 }
 0x24b   :  { %v234_v18 = vadd.f32 1e-12, %v230_v16  ;;  %v235_v19 = vadd.f32 1e-12, %v231_v17  ;;  %s821_s3 = scalar_lea.vmem %s615_s18, 256  ;;  %p826_p3 = scmp.lt.s32.totalorder %s615_s18, %s615_s18 }
 0x24c   :  { %v228_v20 = vpop.xlane.xlu1 %227  ;;  %p822_p2 = scmp.ne.s32.totalorder %s615_s18, %s821_s3  ;;  %p827_p4 = scmp.lt.s32.totalorder %s821_s3, %s821_s3 }
 0x24d   :  { %747 = vrsqrt.f32 %v234_v18  ;;  %v232_v21 = vmul.f32 0.03125, %v228_v20 }
 0x24e   :  { %749 = vrsqrt.f32 %v235_v19  ;;  %p828_p5 = por %p827_p4, %p826_p3 }
 0x24f   :  { %v236_v22 = vadd.f32 1e-12, %v232_v21 }
 0x250   :  { %p829_p6 = pnand %p828_p5, %p822_p2 }
 0x251   :  { %751 = vrsqrt.f32 %v236_v22 }
 0x253   :  { %v746_v23 = vpop.eup %745 }
 0x254   :  { %v241_v24 = vmul.f32 %v746_v23, %v209_v58  ;;  %v899_v58 = vmov 0.0  }
 0x255   :  { %276 = vst.msk [vmem:[#allocation4] sm:$0xff] %vm271_vm1, %v899_v58  ;;  %277 = vst.msk [vmem:[#allocation4 + $0x8] sm:$0xff] %vm271_vm1, %v899_v58  ;;  %v1129_v45 = vsel %vm531_vm8, 1.0, %v899_v58 }
 0x256   :  { %v252_v28 = vmul.f32 %v661_v25, %v241_v24  ;;  %278 = vst.msk [vmem:[#allocation4 + $0x10] sm:$0xff] %vm271_vm1, %v899_v58  ;;  %279 = vst.msk [vmem:[#allocation4 + $0x18] sm:$0xff] %vm271_vm1, %v899_v58 }
 0x257   :  { %v748_v26 = vpop.eup %747  ;;  %280 = vst.msk [vmem:[#allocation5] sm:$0xff] %vm271_vm1, %v899_v58  ;;  %281 = vst.msk [vmem:[#allocation5 + $0x8] sm:$0xff] %vm271_vm1, %v899_v58 }
 0x258   :  { %v750_v27 = vpop.eup %749  ;;  %v242_v29 = vmul.f32 %v748_v26, %v210_v1  ;;  %v263_v34 = vadd.f32 %v662_v30, %v252_v28  ;;  %282 = vst.msk [vmem:[#allocation5 + $0x10] sm:$0xff] %vm271_vm1, %v899_v58  ;;  %283 = vst.msk [vmem:[#allocation5 + $0x18] sm:$0xff] %vm271_vm1, %v899_v58 }
 0x259   :  { %v243_v31 = vmul.f32 %v750_v27, %v211_v57  ;;  %v898_v57 = vmov 0  }
 0x25a   :  { %v253_v32 = vmul.f32 %v661_v25, %v242_v29  ;;  %729 = vset.pattern.permute.xlu0 %v898_v57  ;;  %730 = vset.pattern.permute.xlu1 %v898_v57  ;;  %v484_v29 = vlaneseq }
 0x25b   :  { %v752_v33 = vpop.eup %751  ;;  %v254_v36 = vmul.f32 %v661_v25, %v243_v31 }
 0x25c   :  { %v264_v35 = vadd.f32 %v662_v30, %v253_v32  ;;  %v244_v37 = vmul.f32 %v752_v33, %v212_v0  ;;  %v1065_v0 = vld [vmem:[#allocation3 + $0x10] sm:$0xff]  ;;  %v485_v32 = vand.u32 127, %v484_v29  ;;  %v453_v57 = vld [vmem:[#allocation4] sm:$0xff] }
 0x25d   :  { %v265_v40 = vadd.f32 %v662_v30, %v254_v36 }
 0x25e   :  { %v267_v38 = vpack.c.bf16 %v264_v35, %v263_v34  ;;  %v255_v39 = vmul.f32 %v661_v25, %v244_v37 }
 0x260   :  { %269 = vst.msk [vmem:[#allocation2] sm:$0xff] %vm100_vm0, %v267_v38  ;;  %v266_v41 = vadd.f32 %v662_v30, %v255_v39 }
 0x262   :  { %v268_v42 = vpack.c.bf16 %v266_v41, %v265_v40  ;;  %v1119_v41 = vsel %vm530_vm6, 1.0, %v899_v58 }
 0x264   :  { %270 = vst.msk [vmem:[#allocation2 + $0x8] sm:$0xff] %vm100_vm0, %v268_v42  ;;  %v1122_v42 = vsel %vm529_vm7, 1.0, %v899_v58 }
 0x267   :  { %v284_v43 = vld [vmem:[#allocation2] sm:$0xff] }
 0x268   :  { %711 = vmatprep.mubr.msk.bf16.mxu1 %vm100_vm0, %v284_v43  ;;  %v591_v43 = vsel %vm271_vm1, %v1122_v42, 0.0 }
 0x26b   :  { %v285_v44 = vld [vmem:[#allocation2 + $0x8] sm:$0xff] }
 0x26c   :  { %712 = vmatmul.mubr.msk.bf16.vlgmr.msra.gmra.mrb[0].mxu1 %vm100_vm0, %v285_v44  ;;  %v592_v44 = vsel %vm271_vm1, %v1119_v41, 0.0 }
 0x33f   :  { %v713_v47 = vpop.f32.mrb[0].mxu1 }
 0x340   :  { %v350_v48 = vpop.f32.mrb[1].mxu1  ;;  %v1028_v51 = vadd.f32 %v713_v47, %v663_v46  ;;  %v593_v47 = vadd.f32 %v592_v44, %v591_v43 }
 0x341   :  { %v1026_v49 = vadd.f32 %v663_v46, %v350_v48  ;;  %v714_v50 = vpop.f32.mrb[2].mxu1  ;;  %v594_v48 = vsel %vm271_vm1, %v1129_v45, 0.0 }
 0x342   :  { %v1030_v52 = vadd.f32 %v714_v50, %v663_v46  ;;  %v353_v53 = vpop.f32.mrb[3].mxu1  ;;  %v595_v50 = vadd.f32 %v594_v48, %v593_v47 }
 0x343   :  { %v1032_v54 = vadd.f32 %v663_v46, %v353_v53  ;;  %389 = vmax.xlane.f32.xlu0 %v1026_v49  ;;  %v1132_v46 = vsel %vm532_vm9, 1.0, %v899_v58 }
 0x344   :  { %v688_v55 = vpack.c.bf16 %v1030_v52, %v1028_v51 }
 0x345   :  { %v683_v56 = vpack.c.bf16 %v1032_v54, %v1026_v49  ;;  %391 = vmax.xlane.f32.xlu1 %v1032_v54 }
 0x346   :  { %690 = vst [vmem:[#allocation11 + $0x8] sm:$0xff] %v688_v55  }
 0x347   :  { %684 = vst [vmem:[#allocation11] sm:$0xff] %v683_v56   ;;  %393 = vmax.xlane.f32.xlu0 %v1028_v51 }
 0x349   :  { %395 = vmax.xlane.f32.xlu1 %v1030_v52 }
 0x3d0   :  { %v390_v60 = vpop.xlane.xlu0 %389 }
 0x3d1   :  { %v1063_v62 = vmax.f32 %v1058_v59, %v390_v60 }
 0x3d2   :  { %v392_v63 = vpop.xlane.xlu1 %391 }
 0x3d3   :  { %v401_v1 = vsub.f32 %v1058_v59, %v1063_v62  ;;  %470 = vst.msk [vmem:[#allocation3] sm:$0xff] %vm271_vm1, %v1063_v62  ;;  %v1072_v2 = vmax.f32 %v1060_v61, %v392_v63  ;;  %415 = vperm.xlu0 %729, %v1063_v62   ;;  %v454_v62 = vld [vmem:[#allocation4 + $0x8] sm:$0xff] }
 0x3d4   :  { %v394_v3 = vpop.xlane.xlu0 %393 }
 0x3d5   :  { %v402_v5 = vsub.f32 %v1060_v61, %v1072_v2  ;;  %471 = vst.msk [vmem:[#allocation3 + $0x8] sm:$0xff] %vm271_vm1, %v1072_v2  ;;  %v1082_v6 = vmax.f32 %v1065_v0, %v394_v3  ;;  %v456_v3 = vld [vmem:[#allocation4 + $0x18] sm:$0xff] }
 0x3d6   :  { %v396_v7 = vpop.xlane.xlu1 %395 }
 0x3d7   :  { %v403_v8 = vsub.f32 %v1065_v0, %v1082_v6  ;;  %472 = vst.msk [vmem:[#allocation3 + $0x10] sm:$0xff] %vm271_vm1, %v1082_v6  ;;  %v1089_v9 = vmax.f32 %v1075_v4, %v396_v7  ;;  %425 = vperm.xlu1 %730, %v1082_v6   ;;  %v407_v53 = vmul.f32 1.442695, %v402_v5  ;;  %v455_v5 = vld [vmem:[#allocation4 + $0x10] sm:$0xff] }
 0x3d9   :  { %v404_v10 = vsub.f32 %v1075_v4, %v1089_v9  ;;  %473 = vst.msk [vmem:[#allocation3 + $0x18] sm:$0xff] %vm271_vm1, %v1089_v9 }
 0x3db   :  { %420 = vperm.xlu1 %730, %v1072_v2   ;;  %v411_v55 = vmul.f32 1.442695, %v404_v10 }
 0x3de   :  { %v543_v47 = vld [vmem:[#allocation3 + $0x10] sm:$0xff] }
 0x3df   :  { %430 = vperm.xlu1 %730, %v1089_v9  }
 0x3e3   :  { %487 = vperm.xlu1 %730, %v474_v11  }
 0x3e7   :  { %490 = vperm.xlu1 %730, %v475_v12  }
 0x3eb   :  { %493 = vperm.xlu1 %730, %v476_v13   ;;  %v503_v13 = vld [vmem:[#allocation5 + $0x8] sm:$0xff] }
 0x3ef   :  { %496 = vperm.xlu1 %730, %v477_v14   ;;  %v502_v14 = vld [vmem:[#allocation5] sm:$0xff] }
 0x452   :  { %v416_v15 = vpop.permute.xlu0 %415 }
 0x453   :  { %v433_v16 = vsub.f32 %v1026_v49, %v416_v15 }
 0x455   :  { %v437_v17 = vmul.f32 1.442695, %v433_v16 }
 0x456   :  { %v426_v18 = vpop.permute.xlu1 %425 }
 0x457   :  { %753 = vpow2.f32 %v437_v17  ;;  %v435_v19 = vsub.f32 %v1028_v51, %v426_v18 }
 0x459   :  { %v441_v23 = vmul.f32 1.442695, %v435_v19  ;;  %v505_v19 = vld [vmem:[#allocation5 + $0x18] sm:$0xff] }
 0x45a   :  { %v421_v20 = vpop.permute.xlu1 %420 }
 0x45b   :  { %v434_v21 = vsub.f32 %v1032_v54, %v421_v20  ;;  %v504_v20 = vld [vmem:[#allocation5 + $0x10] sm:$0xff] }
 0x45d   :  { %v439_v22 = vmul.f32 1.442695, %v434_v21 }
 0x45e   :  { %v431_v24 = vpop.permute.xlu1 %430 }
 0x45f   :  { %755 = vpow2.f32 %v439_v22  ;;  %v436_v25 = vsub.f32 %v1030_v52, %v431_v24 }
 0x460   :  { %757 = vpow2.f32 %v441_v23 }
 0x461   :  { %v754_v26 = vpop.eup %753  ;;  %v443_v27 = vmul.f32 1.442695, %v436_v25 }
 0x462   :  { %v488_v28 = vpop.permute.xlu1 %487  ;;  %445 = vadd.xlane.f32.xlu1 %v754_v26 }
 0x463   :  { %759 = vpow2.f32 %v443_v27  ;;  %vm498_vm2 = vcmp.eq.s32.totalorder %v485_v32, %v488_v28 }
 0x464   :  { %v506_v37 = vsel %vm498_vm2, %v1026_v49, 0.0  ;;  %v596_v49 = vsel %vm271_vm1, %v1132_v46, 0.0 }
 0x466   :  { %v491_v30 = vpop.permute.xlu1 %490 }
 0x467   :  { %vm499_vm3 = vcmp.eq.s32.totalorder %v485_v32, %v491_v30  ;;  %v541_v30 = vld [vmem:[#allocation3] sm:$0xff] }
 0x468   :  { %v507_v38 = vsel %vm499_vm3, %v1032_v54, 0.0  ;;  %v409_v54 = vmul.f32 1.442695, %v403_v8 }
 0x469   :  { %v756_v31 = vpop.eup %755 }
 0x46a   :  { %447 = vadd.xlane.f32.xlu0 %v756_v31  ;;  %v494_v33 = vpop.permute.xlu1 %493  ;;  %v758_v34 = vpop.eup %757 }
 0x46b   :  { %vm500_vm4 = vcmp.eq.s32.totalorder %v485_v32, %v494_v33 }
 0x46c   :  { %v508_v39 = vsel %vm500_vm4, %v1028_v51, 0.0  ;;  %v597_v51 = vadd.f32 %v596_v49, %v595_v50  ;;  %v544_v49 = vld [vmem:[#allocation3 + $0x18] sm:$0xff] }
 0x46d   :  { %v760_v35 = vpop.eup %759 }
 0x46e   :  { %449 = vadd.xlane.f32.xlu0 %v758_v34  ;;  %451 = vadd.xlane.f32.xlu1 %v760_v35  ;;  %v497_v36 = vpop.permute.xlu1 %496  ;;  %v542_v35 = vld [vmem:[#allocation3 + $0x8] sm:$0xff] }
 0x46f   :  { %vm501_vm5 = vcmp.eq.s32.totalorder %v485_v32, %v497_v36 }
 0x470   :  { %v509_v40 = vsel %vm501_vm5, %v1030_v52, 0.0  ;;  %v405_v52 = vmul.f32 1.442695, %v401_v1 }
 0x472   :  { %510 = vadd.xlane.f32.xlu0 %v506_v37  ;;  %512 = vadd.xlane.f32.xlu1 %v507_v38  ;;  %761 = vpow2.f32 %v405_v52 }
 0x473   :  { %763 = vpow2.f32 %v407_v53 }
 0x474   :  { %765 = vpow2.f32 %v409_v54 }
 0x475   :  { %767 = vpow2.f32 %v411_v55 }
 0x476   :  { %514 = vadd.xlane.f32.xlu0 %v508_v39  ;;  %516 = vadd.xlane.f32.xlu1 %v509_v40 }
 0x47a   :  { %598 = vadd.xlane.f32.xlu1 %v597_v51 }
 0x47c   :  { %v762_v56 = vpop.eup %761 }
 0x47d   :  { %v457_v58 = vmul.f32 %v762_v56, %v453_v57  ;;  %v764_v61 = vpop.eup %763 }
 0x47e   :  { %v766_v63 = vpop.eup %765  ;;  %v458_v1 = vmul.f32 %v764_v61, %v454_v62 }
 0x47f   :  { %v768_v0 = vpop.eup %767  ;;  %v459_v8 = vmul.f32 %v766_v63, %v455_v5 }
 0x480   :  { %v460_v7 = vmul.f32 %v768_v0, %v456_v3 }
 0x4ef   :  { %v446_v59 = vpop.xlane.xlu1 %445 }
 0x4f0   :  { %v461_v60 = vadd.f32 %v457_v58, %v446_v59 }
 0x4f2   :  { %466 = vst.msk [vmem:[#allocation4] sm:$0xff] %vm271_vm1, %v461_v60 }
 0x4f7   :  { %v448_v2 = vpop.xlane.xlu0 %447 }
 0x4f8   :  { %v462_v6 = vadd.f32 %v458_v1, %v448_v2 }
 0x4f9   :  { %v545_v4 = vld [vmem:[#allocation4] sm:$0xff] }
 0x4fa   :  { %467 = vst.msk [vmem:[#allocation4 + $0x8] sm:$0xff] %vm271_vm1, %v462_v6  ;;  %769 = vlog2.f32 %v545_v4 }
 0x4fb   :  { %v452_v9 = vpop.xlane.xlu1 %451  ;;  %v450_v10 = vpop.xlane.xlu0 %449 }
 0x4fc   :  { %v464_v11 = vadd.f32 %v460_v7, %v452_v9  ;;  %v463_v12 = vadd.f32 %v459_v8, %v450_v10 }
 0x4fe   :  { %469 = vst.msk [vmem:[#allocation4 + $0x18] sm:$0xff] %vm271_vm1, %v464_v11  ;;  %468 = vst.msk [vmem:[#allocation4 + $0x10] sm:$0xff] %vm271_vm1, %v463_v12 }
 0x4ff   :  { %v513_v15 = vpop.xlane.xlu1 %512  ;;  %v511_v16 = vpop.xlane.xlu0 %510 }
 0x500   :  { %v519_v17 = vadd.f32 %v513_v15, %v503_v13  ;;  %v518_v18 = vadd.f32 %v511_v16, %v502_v14 }
 0x501   :  { %v546_v21 = vld [vmem:[#allocation4 + $0x8] sm:$0xff] }
 0x502   :  { %523 = vst.msk [vmem:[#allocation5 + $0x8] sm:$0xff] %vm271_vm1, %v519_v17  ;;  %522 = vst.msk [vmem:[#allocation5] sm:$0xff] %vm271_vm1, %v518_v18  ;;  %771 = vlog2.f32 %v546_v21 }
 0x503   :  { %v517_v22 = vpop.xlane.xlu1 %516  ;;  %v515_v23 = vpop.xlane.xlu0 %514 }
 0x504   :  { %v770_v24 = vpop.eup %769  ;;  %v521_v25 = vadd.f32 %v517_v22, %v505_v19  ;;  %v520_v26 = vadd.f32 %v515_v23, %v504_v20 }
 0x505   :  { %v547_v27 = vld [vmem:[#allocation4 + $0x10] sm:$0xff]  ;;  %v548_v28 = vld [vmem:[#allocation4 + $0x18] sm:$0xff]  ;;  %v550_v29 = vmul.f32 0.6931472, %v770_v24 }
 0x506   :  { %525 = vst.msk [vmem:[#allocation5 + $0x18] sm:$0xff] %vm271_vm1, %v521_v25  ;;  %524 = vst.msk [vmem:[#allocation5 + $0x10] sm:$0xff] %vm271_vm1, %v520_v26  ;;  %773 = vlog2.f32 %v547_v27 }
 0x507   :  { %775 = vlog2.f32 %v548_v28  ;;  %v557_v31 = vadd.f32 %v550_v29, %v541_v30 }
 0x509   :  { %v561_v33 = vld [vmem:[#allocation5] sm:$0xff]  ;;  %v562_v39 = vld [vmem:[#allocation5 + $0x8] sm:$0xff] }
 0x50a   :  { %v565_v37 = vsub.f32 %v557_v31, %v561_v33 }
 0x50c   :  { %v772_v32 = vpop.eup %771  ;;  %v569_v51 = vmul.f32 %v1122_v42, %v565_v37 }
 0x50d   :  { %v552_v34 = vmul.f32 0.6931472, %v772_v32  ;;  %v563_v54 = vld [vmem:[#allocation5 + $0x10] sm:$0xff]  ;;  %v564_v55 = vld [vmem:[#allocation5 + $0x18] sm:$0xff] }
 0x50e   :  { %v573_v60 = vsel %vm271_vm1, %v569_v51, 0.0 }
 0x50f   :  { %v558_v36 = vadd.f32 %v552_v34, %v542_v35 }
 0x510   :  { %v774_v38 = vpop.eup %773 }
 0x511   :  { %v776_v40 = vpop.eup %775  ;;  %v554_v43 = vmul.f32 0.6931472, %v774_v38  ;;  %v566_v44 = vsub.f32 %v558_v36, %v562_v39 }
 0x512   :  { %v556_v48 = vmul.f32 0.6931472, %v776_v40 }
 0x513   :  { %v559_v50 = vadd.f32 %v554_v43, %v543_v47  ;;  %v570_v52 = vmul.f32 %v1119_v41, %v566_v44 }
 0x514   :  { %v560_v53 = vadd.f32 %v556_v48, %v544_v49 }
 0x515   :  { %v567_v56 = vsub.f32 %v559_v50, %v563_v54  ;;  %v574_v57 = vsel %vm271_vm1, %v570_v52, 0.0 }
 0x516   :  { %v568_v58 = vsub.f32 %v560_v53, %v564_v55  ;;  %v575_v62 = vadd.f32 %v574_v57, %v573_v60 }
 0x517   :  { %v571_v59 = vmul.f32 %v1129_v45, %v567_v56 }
 0x518   :  { %v572_v61 = vmul.f32 %v1132_v46, %v568_v58 }
 0x519   :  { %v576_v63 = vsel %vm271_vm1, %v571_v59, 0.0 }
 0x51a   :  { %v577_v1 = vadd.f32 %v576_v63, %v575_v62  ;;  %v578_v42 = vsel %vm271_vm1, %v572_v61, 0.0 }
 0x51c   :  { %v579_v41 = vadd.f32 %v578_v42, %v577_v1 }
 0x51e   :  { %580 = vadd.xlane.f32.xlu0 %v579_v41 }
 0x51f   :  { %832 = shalt.err (!%p829_p6)
}
 0x520   :  { %s833_s20 = scalar_lea.hbm %s1218_s8, 256 }
 0x521   :  { %p834_p7 = scmp.ne.s32.totalorder %s1218_s8, %s833_s20  ;;  %p837_p8 = scmp.lt.u32.totalorder %s833_s20, %s1218_s8 }
 0x523   :  { %p839_p9 = pnand %p837_p8, %p834_p7 }
 0x525   :  { %842 = shalt.err (!%p839_p9)
}
 0x526   :  { %s901_s4 = smov 64   ;;  %s902_s16 = smov 4   ;;  %v599_v45 = vpop.xlane.xlu1 %598 }
 0x527   :  { %620 = dma.vmem_to_hbm [thread:$0]  %s615_s18, 256, %s1218_s8, [#allocation8], %s901_s4, %s901_s4, %s902_s16   ;;  %v600_v46 = vrot.slane %v599_v45, 4 }
 0x528   :  { %s903_s25 = smov [#allocation12]   ;;  %s904_s6 = smov [#allocation14]  }
 0x529   :  { %v601_v0 = vadd.f32 %v600_v46, %v599_v45  ;;  %s627_s26 = sshll.u32 %s903_s25, 4  ;;  %s637_s8 = sshll.u32 %s904_s6, 4  ;;  %s628_s26 = int_to_ptr.vmem [resolvable:$true] %s627_s26  ;;  %s1178_s8 = int_to_ptr.vmem [resolvable:$true] %s637_s8 }
 0x52a   :  { %s843_s28 = scalar_lea.vmem %s628_s26, 16  ;;  %s847_s7 = scalar_lea.vmem %s628_s26, 32 }
 0x52b   :  { %v602_v2 = vrot.slane %v601_v0, 2  ;;  %p844_p10 = scmp.ne.s32.totalorder %s628_s26, %s843_s28  ;;  %p848_p11 = scmp.lt.s32.totalorder %s628_s26, %s628_s26 }
 0x52c   :  { %p849_p12 = scmp.lt.s32.totalorder %s847_s7, %s843_s28 }
 0x52d   :  { %v603_v4 = vadd.f32 %v602_v2, %v601_v0 }
 0x52e   :  { %p850_p13 = por %p849_p12, %p848_p11 }
 0x52f   :  { %v604_v9 = vrot.slane %v603_v4, 1 }
 0x530   :  { %p851_p0 = pnand %p850_p13, %p844_p10 }
 0x531   :  { %v605_v12 = vadd.f32 %v604_v9, %v603_v4 }
 0x5ab   :  { %v581_v3 = vpop.xlane.xlu0 %580 }
 0x5ac   :  { %v582_v5 = vrot.slane %v581_v3, 4 }
 0x5ae   :  { %v583_v6 = vadd.f32 %v582_v5, %v581_v3 }
 0x5b0   :  { %v584_v7 = vrot.slane %v583_v6, 2 }
 0x5b2   :  { %v585_v8 = vadd.f32 %v584_v7, %v583_v6 }
 0x5b4   :  { %v586_v10 = vrot.slane %v585_v8, 1 }
 0x5b6   :  { %v587_v11 = vadd.f32 %v586_v10, %v585_v8 }
 0x5b8   :  { %715 = vpush %v587_v11 }
 0x5b9   :  { %717 = vpush %v605_v12 }
 0x5e9   :  { %s716_s27 = spop %715 }
 0x5ea   :  { %v589_v13 = vstv %s716_s27  ;;  %s718_s5 = spop %717 }
 0x5eb   :  { %590 = vst [vmem:[#allocation12] sm:$0x1] %v589_v13  ;;  %v607_v14 = vstv %s718_s5 }
 0x5ec   :  { %608 = vst [vmem:[#allocation14] sm:$0x1] %v607_v14 }
 0x5ed   :  { %854 = shalt.err (!%p851_p0)
}
 0x5ee   :  { %s855_s11 = scalar_lea.hbm %s1219_s9, 16 }
 0x5ef   :  { %p856_p1 = scmp.ne.s32.totalorder %s1219_s9, %s855_s11  ;;  %p859_p2 = scmp.lt.u32.totalorder %s855_s11, %s1219_s9 }
 0x5f1   :  { %p861_p3 = pnand %p859_p2, %p856_p1 }
 0x5f3   :  { %864 = shalt.err (!%p861_p3)
}
 0x5f4   :  { %630 = dma.vmem_to_hbm [thread:$0]  %s628_s26, 16, %s1219_s9, [#allocation13]  }
 0x5f5   :  { %s865_s3 = scalar_lea.vmem %s1178_s8, 16  ;;  %s869_s14 = scalar_lea.vmem %s1178_s8, 32 }
 0x5f6   :  { %p866_p4 = scmp.ne.s32.totalorder %s1178_s8, %s865_s3  ;;  %p870_p5 = scmp.lt.s32.totalorder %s1178_s8, %s1178_s8 }
 0x5f7   :  { %p871_p6 = scmp.lt.s32.totalorder %s869_s14, %s865_s3 }
 0x5f9   :  { %p872_p7 = por %p871_p6, %p870_p5 }
 0x5fb   :  { %p873_p8 = pnand %p872_p7, %p866_p4 }
 0x5fd   :  { %876 = shalt.err (!%p873_p8)
}
 0x5fe   :  { %s877_s21 = scalar_lea.hbm %s1220_s10, 16 }
 0x5ff   :  { %p878_p9 = scmp.ne.s32.totalorder %s1220_s10, %s877_s21  ;;  %p881_p10 = scmp.lt.u32.totalorder %s877_s21, %s1220_s10 }
 0x601   :  { %p883_p11 = pnand %p881_p10, %p878_p9 }
 0x603   :  { %886 = shalt.err (!%p883_p11)
}
 0x604   :  { %640 = dma.vmem_to_hbm [thread:$0]  %s1178_s8, 16, %s1220_s10, [#allocation13]  }
 0x605   :  { %891 = dma.done.wait [#allocation8], 256  }
 0x606   :  { %892 = vsyncadd [#allocation8], 4294967040 }
 0x607   :  { %893 = dma.done.wait [#allocation13], 32  }
 0x608   :  { %894 = vsyncadd [#allocation13], 4294967264 }
 0x609   :  { %650 = vsyncpa [#allocation7], 1 }
 0x60a   :  { %651 = vsyncpa [#allocation10], 1 }
 0x60b   :  { %652 = vsyncpa [#allocation8], 1 }
 0x60c   :  { %653 = vsyncpa [#allocation13], 1 }

</bundles_post_ra>
